<compile_context>
chip_gen: v7x
topology: tpu7x:2x2x1
jax: 0.10.0
libtpu: 0.0.40
codegen_flags: <defaults>
</compile_context>

<pallas_src>
import jax
import jax.numpy as jnp
from jax.experimental import pallas as pl
from jax.experimental.pallas import tpu as pltpu


def _round_up(x, m):
    return ((x + m - 1) // m) * m


def _select_block_b(B):
    """Generation-aware batch tile (batch lives on the lane axis -> x128)."""
    kind = ""
    try:
        kind = jax.devices()[0].device_kind.lower()
    except Exception:
        pass
    multi_tc = "v7" in kind            # v7x: 2 TensorCores per chip
    cap = 8192 if multi_tc else 16384  # ~0.5 KiB VMEM per lane-column -> safe
    b_pad = _round_up(max(B, 1), 128)
    if multi_tc and b_pad > 128:
        # Guarantee >= 2 grid steps so the "parallel" axis spans both cores.
        tile = _round_up(pl.cdiv(b_pad, 2), 128)
    else:
        # Single TC (v5e/v6e): one big step is fastest when it fits VMEM.
        tile = b_pad
    return min(tile, cap)


def _critic_kernel(x_ref, w1_ref, b1_ref, w2_ref, b2_ref, wq_ref, bq_ref,
                   q_ref):
    # Feature-major layout: batch on the lane axis.
    #   x_ref : (state_dim+action_dim, TB)
    #   w1_ref: (fc1, state_dim+action_dim)   -- PyTorch Linear layout
    #   b1_ref: (fc1, 1)      w2_ref: (fc2, fc1)     b2_ref: (fc2, 1)
    #   wq_ref: (fc2, 1)      bq_ref: (1, 1)
    #   q_ref : (1, TB)
    h1 = jnp.dot(w1_ref[...], x_ref[...], preferred_element_type=jnp.float32)
    h1 = jnp.maximum(h1 + b1_ref[...], 0.0)

    h2 = jnp.dot(w2_ref[...], h1, preferred_element_type=jnp.float32)
    h2 = jnp.maximum(h2 + b2_ref[...], 0.0)

    # Q head (out_features == 1): VPU multiply + cross-sublane reduce (XLU),
    # producing a lane-dense (1, TB) row directly -> unmasked dense stores.
    q_ref[...] = (jnp.sum(h2 * wq_ref[...], axis=0, keepdims=True)
                  + bq_ref[...])


def critic_forward(state, action, params, *, block_b=None):
    """Pallas-backed CriticNetwork.forward(state, action) -> (B, 1) f32."""
    w1, b1, w2, b2, wq_col, bq = params

    state = state.astype(jnp.float32)
    action = action.astype(jnp.float32)

    B, state_dim = state.shape
    action_dim = action.shape[1]
    in_dim = state_dim + action_dim
    fc1_dim = w1.shape[0]
    fc2_dim = w2.shape[0]

    if block_b is None:
        block_b = _select_block_b(B)
    block_b = max(128, _round_up(block_b, 128))

    b_pad = _round_up(B, block_b)
    grid = (b_pad // block_b,)

    # Cheap wrapper-side concat + pad + transpose (64 B/row, fuses in XLA).
    x = jnp.concatenate([state, action], axis=1)
    if b_pad != B:
        x = jnp.pad(x, ((0, b_pad - B), (0, 0)))
    x_t = x.T                                    # (in_dim, b_pad)

    def resident(shape):
        # Weights / biases: same block every grid step -> stay in VMEM.
        return pl.BlockSpec(shape, lambda i: (0, 0))

    flops = 2 * B * (in_dim * fc1_dim + fc1_dim * fc2_dim + fc2_dim)
    bytes_accessed = (b_pad * (in_dim + 1) * 4
                      + (fc1_dim * in_dim + fc1_dim
                         + fc2_dim * fc1_dim + fc2_dim + fc2_dim + 1) * 4)

    q_row = pl.pallas_call(
        _critic_kernel,
        out_shape=jax.ShapeDtypeStruct((1, b_pad), jnp.float32),
        grid=grid,
        in_specs=[
            pl.BlockSpec((in_dim, block_b), lambda i: (0, i)),  # x.T (streamed)
            resident((fc1_dim, in_dim)),                        # W1
            resident((fc1_dim, 1)),                             # b1
            resident((fc2_dim, fc1_dim)),                       # W2
            resident((fc2_dim, 1)),                             # b2
            resident((fc2_dim, 1)),                             # Wq (column)
            resident((1, 1)),                                   # bq
        ],
        out_specs=pl.BlockSpec((1, block_b), lambda i: (0, i)),
        compiler_params=pltpu.CompilerParams(
            dimension_semantics=("parallel",)),
        cost_estimate=pl.CostEstimate(
            flops=flops, transcendentals=0, bytes_accessed=bytes_accessed),
    )(x_t, w1, b1, w2, b2, wq_col, bq)

    return q_row[0, :B].reshape(B, 1)


def init_params(key, state_dim, action_dim, fc1_dim, fc2_dim):
    """PyTorch-Linear-style init (U[-1/sqrt(fan_in), 1/sqrt(fan_in)]).

    Returns (W1, b1, W2, b2, Wq_col, bq) with weights in PyTorch
    (out_features, in_features) layout (what the transposed kernel wants),
    biases as (out_features, 1) columns, and the Q head as a (fc2, 1) column.
    """
    dims = [
        (state_dim + action_dim, fc1_dim),
        (fc1_dim, fc2_dim),
        (fc2_dim, 1),
    ]
    raw = []
    for fan_in, fan_out in dims:
        key, kw, kb = jax.random.split(key, 3)
        bound = 1.0 / float(fan_in) ** 0.5
        w = jax.random.uniform(kw, (fan_out, fan_in), jnp.float32,
                               -bound, bound)
        b = jax.random.uniform(kb, (fan_out, 1), jnp.float32, -bound, bound)
        raw += [w, b]
    w1, b1, w2, b2, wq, bq = raw
    wq_col = wq.T                      # (fc2, 1)
    return (w1, b1, w2, b2, wq_col, bq)


def reference_forward(state, action, params):
    """Plain-JAX reference matching the PyTorch module exactly."""
    w1, b1, w2, b2, wq_col, bq = params
    x = jnp.concatenate([state, action], axis=1)
    h1 = jnp.maximum(x @ w1.T + b1.T, 0.0)
    h2 = jnp.maximum(h1 @ w2.T + b2.T, 0.0)
    return h2 @ wq_col + bq


if __name__ == "__main__":
    # Small shapes consistent with the module's forward.
    batch = 16
    state_dim = 12
    action_dim = 4
    fc1_dim = 32
    fc2_dim = 32

    key = jax.random.PRNGKey(0)
    k_state, k_action, k_params = jax.random.split(key, 3)

    state = jax.random.normal(k_state, (batch, state_dim), jnp.float32)
    action = jax.random.normal(k_action, (batch, action_dim), jnp.float32)
    params = init_params(k_params, state_dim, action_dim, fc1_dim, fc2_dim)

    q = jax.block_until_ready(critic_forward(state, action, params))
    q_ref = reference_forward(state, action, params)
    assert q.shape == (batch, 1), q.shape
    assert float(jnp.max(jnp.abs(q - q_ref))) < 1e-4, "mismatch vs reference"

    # Ragged batch + multi-step grid path (exercises padding and the
    # "parallel" batch axis across grid steps).
    batch2 = 300
    k_s2, k_a2 = jax.random.split(jax.random.PRNGKey(1))
    state2 = jax.random.normal(k_s2, (batch2, state_dim), jnp.float32)
    action2 = jax.random.normal(k_a2, (batch2, action_dim), jnp.float32)
    q2 = jax.block_until_ready(
        critic_forward(state2, action2, params, block_b=128))
    q2_ref = reference_forward(state2, action2, params)
    assert q2.shape == (batch2, 1), q2.shape
    assert float(jnp.max(jnp.abs(q2 - q2_ref))) < 1e-4, "mismatch (ragged)"

    print("KERNEL_OK")
</pallas_src>

<mosaic_0001>
module attributes {stable_mosaic.version = 11 : i64} {
  func.func @_critic_kernel(%arg0: i32, %arg1: memref<16x128xf32, #tpu.memory_space<vmem>>, %arg2: memref<32x16xf32, #tpu.memory_space<vmem>>, %arg3: memref<32x1xf32, #tpu.memory_space<vmem>>, %arg4: memref<32x32xf32, #tpu.memory_space<vmem>>, %arg5: memref<32x1xf32, #tpu.memory_space<vmem>>, %arg6: memref<32x1xf32, #tpu.memory_space<vmem>>, %arg7: memref<1x1xf32, #tpu.memory_space<vmem>>, %arg8: memref<1x128xf32, #tpu.memory_space<vmem>>) attributes {dimension_semantics = [#tpu.dimension_semantics<parallel>], iteration_bounds = array<i64: 1>, scalar_prefetch = 0 : i64, scratch_operands = 0 : i64, tpu.core_type = #tpu.core_type<tc>, window_params = [{transform_indices = @transform_0, window_bounds = array<i64: 16, 128>}, {pipeline_mode = #tpu.pipeline_mode<synchronous>, transform_indices = @transform_1, window_bounds = array<i64: 32, 16>}, {pipeline_mode = #tpu.pipeline_mode<synchronous>, transform_indices = @transform_2, window_bounds = array<i64: 32, 1>}, {pipeline_mode = #tpu.pipeline_mode<synchronous>, transform_indices = @transform_3, window_bounds = array<i64: 32, 32>}, {pipeline_mode = #tpu.pipeline_mode<synchronous>, transform_indices = @transform_4, window_bounds = array<i64: 32, 1>}, {pipeline_mode = #tpu.pipeline_mode<synchronous>, transform_indices = @transform_5, window_bounds = array<i64: 32, 1>}, {pipeline_mode = #tpu.pipeline_mode<synchronous>, transform_indices = @transform_6, window_bounds = array<i64: 1, 1>}, {transform_indices = @transform_7, window_bounds = array<i64: 1, 128>}]} {
    %c0 = arith.constant 0 : index
    %c0_0 = arith.constant 0 : index
    %0 = vector.load %arg2[%c0, %c0_0] : memref<32x16xf32, #tpu.memory_space<vmem>>, vector<32x16xf32>
    %c0_1 = arith.constant 0 : index
    %c0_2 = arith.constant 0 : index
    %1 = vector.load %arg1[%c0_1, %c0_2] : memref<16x128xf32, #tpu.memory_space<vmem>>, vector<16x128xf32>
    %cst = arith.constant dense<0.000000e+00> : vector<32x128xf32>
    %2 = tpu.matmul %0, %1, %cst {dimension_numbers = #tpu.dot_dimension_numbers<[1], [0], [0], [1], [0, 0, 1, 1], [], []>} : vector<32x16xf32>, vector<16x128xf32>, vector<32x128xf32> -> vector<32x128xf32>
    %c0_3 = arith.constant 0 : index
    %c0_4 = arith.constant 0 : index
    %3 = vector.load %arg3[%c0_3, %c0_4] : memref<32x1xf32, #tpu.memory_space<vmem>>, vector<32x1xf32>
    %4 = vector.broadcast %3 : vector<32x1xf32> to vector<32x128xf32>
    %5 = arith.addf %2, %4 : vector<32x128xf32>
    %cst_5 = arith.constant 0.000000e+00 : f32
    %6 = vector.broadcast %cst_5 : f32 to vector<32x128xf32>
    %7 = arith.maximumf %5, %6 : vector<32x128xf32>
    %c0_6 = arith.constant 0 : index
    %c0_7 = arith.constant 0 : index
    %8 = vector.load %arg4[%c0_6, %c0_7] : memref<32x32xf32, #tpu.memory_space<vmem>>, vector<32x32xf32>
    %cst_8 = arith.constant dense<0.000000e+00> : vector<32x128xf32>
    %9 = tpu.matmul %8, %7, %cst_8 {dimension_numbers = #tpu.dot_dimension_numbers<[1], [0], [0], [1], [0, 0, 1, 1], [], []>} : vector<32x32xf32>, vector<32x128xf32>, vector<32x128xf32> -> vector<32x128xf32>
    %c0_9 = arith.constant 0 : index
    %c0_10 = arith.constant 0 : index
    %10 = vector.load %arg5[%c0_9, %c0_10] : memref<32x1xf32, #tpu.memory_space<vmem>>, vector<32x1xf32>
    %11 = vector.broadcast %10 : vector<32x1xf32> to vector<32x128xf32>
    %12 = arith.addf %9, %11 : vector<32x128xf32>
    %cst_11 = arith.constant 0.000000e+00 : f32
    %13 = vector.broadcast %cst_11 : f32 to vector<32x128xf32>
    %14 = arith.maximumf %12, %13 : vector<32x128xf32>
    %c0_12 = arith.constant 0 : index
    %c0_13 = arith.constant 0 : index
    %15 = vector.load %arg6[%c0_12, %c0_13] : memref<32x1xf32, #tpu.memory_space<vmem>>, vector<32x1xf32>
    %16 = vector.broadcast %15 : vector<32x1xf32> to vector<32x128xf32>
    %17 = arith.mulf %14, %16 : vector<32x128xf32>
    %cst_14 = arith.constant dense<0.000000e+00> : vector<128xf32>
    %18 = vector.multi_reduction <add>, %17, %cst_14 [0] : vector<32x128xf32> to vector<128xf32>
    %19 = vector.shape_cast %18 : vector<128xf32> to vector<1x128xf32>
    %c0_15 = arith.constant 0 : index
    %c0_16 = arith.constant 0 : index
    %20 = vector.load %arg7[%c0_15, %c0_16] : memref<1x1xf32, #tpu.memory_space<vmem>>, vector<1x1xf32>
    %21 = vector.broadcast %20 : vector<1x1xf32> to vector<1x128xf32>
    %22 = arith.addf %19, %21 : vector<1x128xf32>
    %c0_17 = arith.constant 0 : index
    %c0_18 = arith.constant 0 : index
    %23 = vector.load %arg8[%c0_17, %c0_18] : memref<1x128xf32, #tpu.memory_space<vmem>>, vector<1x128xf32>
    tpu.vector_store %arg8[%c0_17, %c0_18], %22 {strides = array<i32>} : memref<1x128xf32, #tpu.memory_space<vmem>>, vector<1x128xf32>,
    return
  }
  func.func @transform_0(%arg0: i32) -> (i32, i32) {
    %c0_i32 = arith.constant 0 : i32
    %c0_i32_0 = arith.constant 0 : i32
    return %c0_i32, %arg0 : i32, i32
  }
  func.func @transform_1(%arg0: i32) -> (i32, i32) {
    %c0_i32 = arith.constant 0 : i32
    %c0_i32_0 = arith.constant 0 : i32
    %c0_i32_1 = arith.constant 0 : i32
    return %c0_i32, %c0_i32_0 : i32, i32
  }
  func.func @transform_2(%arg0: i32) -> (i32, i32) {
    %c0_i32 = arith.constant 0 : i32
    %c0_i32_0 = arith.constant 0 : i32
    %c0_i32_1 = arith.constant 0 : i32
    return %c0_i32, %c0_i32_0 : i32, i32
  }
  func.func @transform_3(%arg0: i32) -> (i32, i32) {
    %c0_i32 = arith.constant 0 : i32
    %c0_i32_0 = arith.constant 0 : i32
    %c0_i32_1 = arith.constant 0 : i32
    return %c0_i32, %c0_i32_0 : i32, i32
  }
  func.func @transform_4(%arg0: i32) -> (i32, i32) {
    %c0_i32 = arith.constant 0 : i32
    %c0_i32_0 = arith.constant 0 : i32
    %c0_i32_1 = arith.constant 0 : i32
    return %c0_i32, %c0_i32_0 : i32, i32
  }
  func.func @transform_5(%arg0: i32) -> (i32, i32) {
    %c0_i32 = arith.constant 0 : i32
    %c0_i32_0 = arith.constant 0 : i32
    %c0_i32_1 = arith.constant 0 : i32
    return %c0_i32, %c0_i32_0 : i32, i32
  }
  func.func @transform_6(%arg0: i32) -> (i32, i32) {
    %c0_i32 = arith.constant 0 : i32
    %c0_i32_0 = arith.constant 0 : i32
    %c0_i32_1 = arith.constant 0 : i32
    return %c0_i32, %c0_i32_0 : i32, i32
  }
  func.func @transform_7(%arg0: i32) -> (i32, i32) {
    %c0_i32 = arith.constant 0 : i32
    %c0_i32_0 = arith.constant 0 : i32
    return %c0_i32, %arg0 : i32, i32
  }
}

</mosaic_0001>

<bundles_post_ra>
// kernel: tpu_custom_call.1
= control target key start
LH: loop header
LB: loop body
LE: loop exit
PB: predicated region body
PF: predicated region fallthrough
CT: control target
= control target key end

     0   :  { %s571_s0 = inlined_call_operand.vmem [shape: f32[16,128], index: 0, kind: input, shape index: {}]   ;;  %s572_s1 = inlined_call_operand.vmem [shape: f32[32,16], index: 1, kind: input, shape index: {}]   ;;  %s573_s2 = inlined_call_operand.vmem [shape: f32[32,1], index: 2, kind: input, shape index: {}]   ;;  %s574_s3 = inlined_call_operand.vmem [shape: f32[32,32], index: 3, kind: input, shape index: {}]   ;;  %s575_s4 = inlined_call_operand.vmem [shape: f32[32,1], index: 4, kind: input, shape index: {}]   ;;  %s576_s5 = inlined_call_operand.vmem [shape: f32[32,1], index: 5, kind: input, shape index: {}]   ;;  %s577_s6 = inlined_call_operand.<no memory space> [shape: f32[1,1], index: 6, kind: input, shape index: {}]   ;;  %s578_s7 = inlined_call_operand.hbm [shape: f32[1,128], index: 7, kind: output, shape index: {}]  }
   0x1   :  { %v12_v0 = vstv %s577_s6 }
   0x2   :  { %13 = vst [vmem:[#allocation2] sm:$0x1] %v12_v0 }
   0x3   :  { %v33_v1 = vld [vmem:[%s571_s0] sm:$0xff]  ;;  %v34_v2 = vld [vmem:[%s571_s0 + $0x8] sm:$0xff]  ;;  %vm59_vm0 = vcmask 130048   ;;  %v440_v5 = vmov 0   ;;  %v37_v7 = vld [vmem:[%s573_s2 + $0x10] sm:$0xff] }
   0x4   :  { %v29_v3 = vld [vmem:[%s572_s1] sm:$0xff]  ;;  %v400_v4 = vpack.c.bf16 %v34_v2, %v33_v1  ;;  %414 = vset.pattern.permute.xlu0 %v440_v5  ;;  %415 = vset.pattern.permute.xlu1 %v440_v5  ;;  %v30_v8 = vld [vmem:[%s572_s1 + $0x8] sm:$0xff]  ;;  %v31_v10 = vld [vmem:[%s572_s1 + $0x10] sm:$0xff] }
   0x5   :  { %380 = vmatprep.mubr.msk.f32.mxu0 %vm59_vm0, %v29_v3  ;;  %v35_v6 = vld [vmem:[%s573_s2] sm:$0xff]  ;;  %v36_v9 = vld [vmem:[%s573_s2 + $0x8] sm:$0xff]  ;;  %51 = vperm.xlu1 %415, %v37_v7   ;;  %v38_v11 = vld [vmem:[%s573_s2 + $0x18] sm:$0xff] }
   0x6   :  { %401 = vmatprep.subr.bf16.mxu0 %v400_v4  ;;  %41 = vperm.xlu0 %414, %v35_v6  }
   0x7   :  { %403 = vmatpush3.bf16.msra.mxu0 %v400_v4 }
   0x8   :  { %14 = vsyncpa [#allocation4], 0  ;;  %v32_v12 = vld [vmem:[%s572_s1 + $0x18] sm:$0xff]  ;;  %v165_v13 = vld [vmem:[%s575_s4] sm:$0xff]  ;;  %vm189_vm1 = vcmask 261120   ;;  %v334_v6 = vlaneseq }
   0x9   :  { %56 = vperm.xlu1 %415, %v38_v11   ;;  %v166_v14 = vld [vmem:[%s575_s4 + $0x8] sm:$0xff]  ;;  %v167_v15 = vld [vmem:[%s575_s4 + $0x10] sm:$0xff]  ;;  %v168_v16 = vld [vmem:[%s575_s4 + $0x18] sm:$0xff] }
   0xa   :  { %381 = vmatmul.mubr.msk.f32.vlgmr.msra.gmra.mrb[0].mxu0 %vm59_vm0, %v30_v8  ;;  %46 = vperm.xlu0 %414, %v36_v9   ;;  %v291_v17 = vld [vmem:[%s576_s5] sm:$0xff]  ;;  %v292_v18 = vld [vmem:[%s576_s5 + $0x8] sm:$0xff]  ;;  %v293_v19 = vld [vmem:[%s576_s5 + $0x10] sm:$0xff]  ;;  %v335_v9 = vshrl.u32 %v334_v6, 7 }
   0xb   :  { %383 = vmatprep.mubr.msk.f32.mxu0 %vm59_vm0, %v31_v10  ;;  %v294_v20 = vld [vmem:[%s576_s5 + $0x18] sm:$0xff]  ;;  %v328_v21 = vld [vmem:[#allocation2] sm:$0x1]  ;;  %v162_v41 = vld [vmem:[%s574_s3 + $0x8] sm:$0xff] }
   0xc   :  { %v161_v22 = vld [vmem:[%s574_s3] sm:$0xff]  ;;  %v163_v42 = vld [vmem:[%s574_s3 + $0x10] sm:$0xff]  ;;  %v164_v43 = vld [vmem:[%s574_s3 + $0x18] sm:$0xff]  ;;  %s441_s3 = smov [#allocation3]  }
   0xd   :  { %176 = vperm.xlu1 %415, %v166_v14   ;;  %394 = vmatprep.mubr.msk.f32.mxu1 %vm189_vm1, %v161_v22  ;;  %s346_s16 = sshll.u32 %s441_s3, 4  ;;  %s347_s16 = int_to_ptr.vmem [resolvable:$true] %s346_s16 }
   0xe   :  { %384 = vmatmul.mubr.msk.f32.gmra.mrb[2].mxu0 %vm59_vm0, %v32_v12  ;;  %171 = vperm.xlu0 %414, %v165_v13   ;;  %v336_v12 = vsub.s32 0, %v335_v9  ;;  %s416_s17 = scalar_lea.vmem %s347_s16, 16  ;;  %s420_s18 = scalar_lea.vmem %s347_s16, 32 }
   0xf   :  { %p417_p0 = scmp.ne.s32.totalorder %s347_s16, %s416_s17  ;;  %p421_p1 = scmp.lt.s32.totalorder %s347_s16, %s347_s16 }
  0x10   :  { %p422_p2 = scmp.lt.s32.totalorder %s420_s18, %s416_s17 }
  0x11   :  { %186 = vperm.xlu1 %415, %v168_v16  }
  0x12   :  { %181 = vperm.xlu0 %414, %v167_v15   ;;  %p423_p3 = por %p422_p2, %p421_p1 }
  0x14   :  { %p424_p4 = pnand %p423_p3, %p417_p0 }
  0x15   :  { %302 = vperm.xlu1 %415, %v292_v18  }
  0x16   :  { %297 = vperm.xlu0 %414, %v291_v17  }
  0x19   :  { %312 = vperm.xlu1 %415, %v294_v20  }
  0x1a   :  { %307 = vperm.xlu0 %414, %v293_v19  }
  0x1e   :  { %331 = vperm.xlu0 %414, %v328_v21  }
  0x84   :  { %v52_v24 = vpop.permute.xlu1 %51 }
  0x85   :  { %v42_v23 = vpop.permute.xlu0 %41 }
  0x88   :  { %v57_v31 = vpop.permute.xlu1 %56 }
  0x89   :  { %v47_v25 = vpop.permute.xlu0 %46 }
  0x8c   :  { %v177_v45 = vpop.permute.xlu1 %176 }
  0x8d   :  { %v172_v44 = vpop.permute.xlu0 %171 }
  0x90   :  { %v187_v47 = vpop.permute.xlu1 %186 }
  0x91   :  { %v182_v46 = vpop.permute.xlu0 %181 }
  0x94   :  { %v303_v54 = vpop.permute.xlu1 %302 }
  0x95   :  { %v298_v52 = vpop.permute.xlu0 %297 }
  0x98   :  { %v313_v3 = vpop.permute.xlu1 %312 }
  0x99   :  { %v308_v1 = vpop.permute.xlu0 %307 }
  0x9d   :  { %v332_v14 = vpop.permute.xlu0 %331 }
  0x9e   :  { %v337_v16 = vrot.slane %v332_v14, %v336_v12 }
  0xdd   :  { %v382_v26 = vpop.f32.mrb[0].mxu0 }
  0xde   :  { %v144_v27 = vadd.f32 %v382_v26, %v47_v25  ;;  %v138_v28 = vpop.f32.mrb[1].mxu0 }
  0xdf   :  { %v139_v29 = vadd.f32 %v138_v28, %v42_v23 }
  0xe0   :  { %v158_v30 = vmax.f32 %v144_v27, 0.0 }
  0xe1   :  { %v157_v32 = vmax.f32 %v139_v29, 0.0  ;;  %v385_v33 = vpop.f32.mrb[2].mxu0 }
  0xe2   :  { %v154_v34 = vadd.f32 %v385_v33, %v57_v31  ;;  %v148_v35 = vpop.f32.mrb[3].mxu0 }
  0xe3   :  { %v149_v36 = vadd.f32 %v148_v35, %v52_v24  ;;  %v404_v37 = vpack.c.bf16 %v158_v30, %v157_v32 }
  0xe4   :  { %v160_v38 = vmax.f32 %v154_v34, 0.0 }
  0xe5   :  { %v159_v39 = vmax.f32 %v149_v36, 0.0  ;;  %405 = vmatprep.subr.bf16.mxu1 %v404_v37 }
  0xe6   :  { %407 = vmatpush3.bf16.msra.mxu1 %v404_v37 }
  0xe7   :  { %v408_v40 = vpack.c.bf16 %v160_v38, %v159_v39 }
  0xe9   :  { %409 = vmatprep.subr.bf16.mxu1 %v408_v40 }
  0xea   :  { %411 = vmatpush3.bf16.msra.mxu1 %v408_v40 }
  0xed   :  { %395 = vmatmul.mubr.msk.f32.vlgmr.msra.gmra.mrb[0].mxu1 %vm189_vm1, %v162_v41 }
  0xee   :  { %397 = vmatprep.mubr.msk.f32.mxu1 %vm189_vm1, %v163_v42 }
  0xf1   :  { %398 = vmatmul.mubr.msk.f32.gmra.mrb[2].mxu1 %vm189_vm1, %v164_v43 }
 0x1c0   :  { %v396_v48 = vpop.f32.mrb[0].mxu1 }
 0x1c1   :  { %v274_v49 = vadd.f32 %v396_v48, %v177_v45  ;;  %v268_v50 = vpop.f32.mrb[1].mxu1 }
 0x1c2   :  { %v269_v51 = vadd.f32 %v268_v50, %v172_v44 }
 0x1c3   :  { %v288_v53 = vmax.f32 %v274_v49, 0.0 }
 0x1c4   :  { %v287_v55 = vmax.f32 %v269_v51, 0.0  ;;  %v399_v56 = vpop.f32.mrb[2].mxu1 }
 0x1c5   :  { %v316_v57 = vmul.f32 %v303_v54, %v288_v53  ;;  %v284_v58 = vadd.f32 %v399_v56, %v187_v47  ;;  %v278_v59 = vpop.f32.mrb[3].mxu1 }
 0x1c6   :  { %v315_v60 = vmul.f32 %v298_v52, %v287_v55  ;;  %v279_v61 = vadd.f32 %v278_v59, %v182_v46 }
 0x1c7   :  { %v290_v63 = vmax.f32 %v284_v58, 0.0 }
 0x1c8   :  { %v319_v62 = vadd.f32 %v316_v57, %v315_v60  ;;  %v289_v0 = vmax.f32 %v279_v61, 0.0 }
 0x1c9   :  { %v318_v4 = vmul.f32 %v313_v3, %v290_v63 }
 0x1ca   :  { %v317_v2 = vmul.f32 %v308_v1, %v289_v0 }
 0x1cc   :  { %v320_v5 = vadd.f32 %v319_v62, %v317_v2 }
 0x1ce   :  { %v321_v7 = vadd.f32 %v320_v5, %v318_v4 }
 0x1d0   :  { %v322_v8 = vrot.slane %v321_v7, 4 }
 0x1d2   :  { %v323_v10 = vadd.f32 %v322_v8, %v321_v7 }
 0x1d4   :  { %v324_v11 = vrot.slane %v323_v10, 2 }
 0x1d6   :  { %v325_v13 = vadd.f32 %v324_v11, %v323_v10 }
 0x1d8   :  { %v326_v15 = vrot.slane %v325_v13, 1 }
 0x1da   :  { %v327_v17 = vadd.f32 %v326_v15, %v325_v13 }
 0x1dc   :  { %v338_v18 = vadd.f32 %v337_v16, %v327_v17 }
 0x1de   :  { %339 = vst [vmem:[#allocation3] sm:$0x1] %v338_v18 }
 0x1df   :  { %427 = shalt.err (!%p424_p4)
}
 0x1e0   :  { %s428_s21 = scalar_lea.hbm %s578_s7, 16 }
 0x1e1   :  { %p429_p5 = scmp.ne.s32.totalorder %s578_s7, %s428_s21  ;;  %p432_p6 = scmp.lt.u32.totalorder %s428_s21, %s578_s7 }
 0x1e3   :  { %p434_p7 = pnand %p432_p6, %p429_p5 }
 0x1e5   :  { %437 = shalt.err (!%p434_p7)
}
 0x1e6   :  { %349 = dma.vmem_to_hbm [thread:$0]  %s347_s16, 16, %s578_s7, [#allocation4]  }
 0x1e7   :  { %438 = dma.done.wait [#allocation4], 16  }
 0x1e8   :  { %439 = vsyncadd [#allocation4], 4294967280 }
 0x1e9   :  { %353 = vsyncpa [#allocation4], 1 }

</bundles_post_ra>
